<compile_context>
chip_gen: v7x
topology: tpu7x:2x2x1
jax: 0.10.0
libtpu: 0.0.40
codegen_flags: <defaults>
</compile_context>

<pallas_src>
import jax
import jax.numpy as jnp
from jax.experimental import pallas as pl
from jax.experimental.pallas import tpu as pltpu

_LANE = 128
_SUBLANE = 8


def _round_up(v, m):
    return ((v + m - 1) // m) * m


def _sublane_multiple(dtype):
    # Sub-32-bit dtypes pack rows along sublanes: 8 (f32) / 16 (bf16) / 32 (i8).
    itemsize = jnp.dtype(dtype).itemsize
    return max(_SUBLANE, (4 // itemsize) * _SUBLANE)


def _vmem_capacity_bytes():
    # Generation-aware VMEM size (v5e/v6e: 128 MiB, v7x: 64 MiB per TC).
    # Hardware query only -- never wraps kernel execution.
    try:
        return int(pltpu.get_tpu_info().vmem_capacity_bytes)
    except Exception:
        return 64 * 1024 * 1024  # conservative: v7x per-TensorCore VMEM


def _linear_kernel(x_ref, w_ref, b_ref, o_ref):
    # x_ref: (tile_n, C_in); w_ref: (C_in, tile_cout); b_ref: (1, tile_cout) f32.
    acc = jnp.dot(x_ref[...], w_ref[...], preferred_element_type=jnp.float32)
    o_ref[...] = (acc + b_ref[...]).astype(o_ref.dtype)


def linear_graph_wrapper(x, edge_index, weight_t, bias, *, tile_n=1024,
                         out_dtype=None):
    """y = x @ weight_t + bias ; edge_index is ignored (matches the module).

    If a bf16 path is wanted, pass x / weight_t already in bf16 (the wrapper
    does not cast x: that would be an extra full HBM pass).
    """
    del edge_index  # LinearGraphWrapper.forward does not use it.

    n, c_in = x.shape
    c_in_w, c_out = weight_t.shape
    if c_in != c_in_w:
        raise ValueError(f"in_channels mismatch: {c_in} vs {c_in_w}")
    out_dtype = x.dtype if out_dtype is None else out_dtype

    xb = jnp.dtype(x.dtype).itemsize
    wb = jnp.dtype(weight_t.dtype).itemsize
    ob = jnp.dtype(out_dtype).itemsize
    sub = _sublane_multiple(x.dtype)

    # --- VMEM budget (generation aware) -------------------------------------
    vmem_cap = _vmem_capacity_bytes()
    vmem_limit = min(3 * vmem_cap // 4, 96 * 1024 * 1024)   # v6e: 96 MiB, v7x: 48 MiB
    vmem_budget = vmem_limit - 8 * 1024 * 1024              # headroom for Mosaic scratch

    # --- optional C_out tiling when the resident weight is too large --------
    c_out_tile = c_out
    if c_out % _LANE == 0:
        while (2 * c_in * c_out_tile * wb > max(vmem_budget // 4, 1)
               and c_out_tile % (2 * _LANE) == 0):
            c_out_tile //= 2
    cout_blocks = c_out // c_out_tile

    # --- row tile ------------------------------------------------------------
    tile = _round_up(min(n, tile_n), sub)

    def _footprint(t):
        # Conservative: everything double-buffered.
        return (2 * t * c_in * xb + 2 * t * c_out_tile * ob
                + 2 * c_in * c_out_tile * wb + 2 * c_out_tile * 4)

    while tile > sub and _footprint(tile) > vmem_budget:
        tile = max(sub, _round_up(tile // 2, sub))

    row_blocks = pl.cdiv(n, tile)

    # v7x has two TensorCores: if there is enough work, keep grid >= 2 so both
    # cores are used.  Harmless (one extra ~0.35us grid step) on v5e/v6e.
    if row_blocks * cout_blocks == 1 and n >= 512:
        tile = _round_up(pl.cdiv(n, 2), sub)
        row_blocks = pl.cdiv(n, tile)

    grid = (cout_blocks, row_blocks)  # rows innermost: weight block stays resident

    # Tiny parameter prep (negligible HBM traffic).
    bias2d = bias.astype(jnp.float32).reshape(1, c_out)

    cost = pl.CostEstimate(
        flops=2 * n * c_in * c_out,
        transcendentals=0,
        bytes_accessed=(cout_blocks * n * c_in * xb   # x re-read once per C_out block
                        + c_in * c_out * wb           # weight read once
                        + c_out * 4                   # bias
                        + n * c_out * ob),            # output write
    )

    return pl.pallas_call(
        _linear_kernel,
        out_shape=jax.ShapeDtypeStruct((n, c_out), out_dtype),
        grid_spec=pltpu.PrefetchScalarGridSpec(
            num_scalar_prefetch=0,
            grid=grid,
            in_specs=[
                pl.BlockSpec((tile, c_in), lambda j, i: (i, 0)),        # x rows
                pl.BlockSpec((c_in, c_out_tile), lambda j, i: (0, j)),  # weight
                pl.BlockSpec((1, c_out_tile), lambda j, i: (0, j)),     # bias
            ],
            out_specs=pl.BlockSpec((tile, c_out_tile), lambda j, i: (i, j)),
        ),
        compiler_params=pltpu.CompilerParams(
            dimension_semantics=("parallel", "parallel"),
            vmem_limit_bytes=vmem_limit,
        ),
        cost_estimate=cost,
    )(x, weight_t, bias2d)


if __name__ == "__main__":
    # Small graph-like problem, deliberately non-aligned to exercise the
    # partial-block path: N not a multiple of 8/128, out_channels < 128.
    N = 203
    in_channels = 64
    out_channels = 96
    E = 512

    key = jax.random.PRNGKey(0)
    kx, kw, kb, ke = jax.random.split(key, 4)

    x = jax.random.normal(kx, (N, in_channels), dtype=jnp.float32)
    # Deterministic parameter init (Kaiming-uniform-ish scale, like nn.Linear).
    bound = 1.0 / (in_channels ** 0.5)
    weight = jax.random.uniform(
        kw, (out_channels, in_channels), minval=-bound, maxval=bound,
        dtype=jnp.float32)
    bias = jax.random.uniform(
        kb, (out_channels,), minval=-bound, maxval=bound, dtype=jnp.float32)
    # edge_index: (2, E) int32 -- present for API parity, unused by forward.
    edge_index = jax.random.randint(ke, (2, E), 0, N, dtype=jnp.int32)

    weight_t = weight.T  # (in_channels, out_channels) for the kernel

    # f32 path (exact module semantics); wrapper composes with jit.
    linear_jit = jax.jit(linear_graph_wrapper)
    y = jax.block_until_ready(linear_jit(x, edge_index, weight_t, bias))
    y_ref = x @ weight.T + bias
    assert y.shape == (N, out_channels)
    assert jnp.allclose(y, y_ref, atol=1e-4, rtol=1e-4)

    # bf16 path: caller supplies bf16 inputs (no in-wrapper cast), f32 output.
    x_bf16 = x.astype(jnp.bfloat16)
    w_bf16 = weight_t.astype(jnp.bfloat16)
    bf16_fn = jax.jit(lambda a, e, w, b: linear_graph_wrapper(
        a, e, w, b, out_dtype=jnp.float32))
    y_bf16 = jax.block_until_ready(bf16_fn(x_bf16, edge_index, w_bf16, bias))
    assert y_bf16.shape == (N, out_channels)
    assert jnp.allclose(y_bf16, y_ref, atol=5e-2, rtol=5e-2)

    print("KERNEL_OK")
</pallas_src>

<mosaic_0001>
module attributes {stable_mosaic.version = 11 : i64} {
  func.func @_linear_kernel(%arg0: i32, %arg1: i32, %arg2: memref<208x64xf32, #tpu.memory_space<vmem>>, %arg3: memref<64x96xf32, #tpu.memory_space<vmem>>, %arg4: memref<1x96xf32, #tpu.memory_space<vmem>>, %arg5: memref<208x96xf32, #tpu.memory_space<vmem>>) attributes {dimension_semantics = [#tpu.dimension_semantics<parallel>, #tpu.dimension_semantics<parallel>], iteration_bounds = array<i64: 1, 1>, scalar_prefetch = 0 : i64, scratch_operands = 0 : i64, tpu.core_type = #tpu.core_type<tc>, window_params = [{transform_indices = @transform_0, window_bounds = array<i64: 208, 64>}, {transform_indices = @transform_1, window_bounds = array<i64: 64, 96>}, {transform_indices = @transform_2, window_bounds = array<i64: 1, 96>}, {transform_indices = @transform_3, window_bounds = array<i64: 208, 96>}]} {
    %c0 = arith.constant 0 : index
    %c0_0 = arith.constant 0 : index
    %0 = vector.load %arg2[%c0, %c0_0] : memref<208x64xf32, #tpu.memory_space<vmem>>, vector<208x64xf32>
    %c0_1 = arith.constant 0 : index
    %c0_2 = arith.constant 0 : index
    %1 = vector.load %arg3[%c0_1, %c0_2] : memref<64x96xf32, #tpu.memory_space<vmem>>, vector<64x96xf32>
    %cst = arith.constant dense<0.000000e+00> : vector<208x96xf32>
    %2 = tpu.matmul %0, %1, %cst {dimension_numbers = #tpu.dot_dimension_numbers<[1], [0], [0], [1], [0, 0, 1, 1], [], []>} : vector<208x64xf32>, vector<64x96xf32>, vector<208x96xf32> -> vector<208x96xf32>
    %c0_3 = arith.constant 0 : index
    %c0_4 = arith.constant 0 : index
    %3 = vector.load %arg4[%c0_3, %c0_4] : memref<1x96xf32, #tpu.memory_space<vmem>>, vector<1x96xf32>
    %4 = vector.broadcast %3 : vector<1x96xf32> to vector<208x96xf32>
    %5 = arith.addf %2, %4 : vector<208x96xf32>
    %c0_5 = arith.constant 0 : index
    %c0_6 = arith.constant 0 : index
    %6 = vector.load %arg5[%c0_5, %c0_6] : memref<208x96xf32, #tpu.memory_space<vmem>>, vector<208x96xf32>
    tpu.vector_store %arg5[%c0_5, %c0_6], %5 {strides = array<i32>} : memref<208x96xf32, #tpu.memory_space<vmem>>, vector<208x96xf32>,
    return
  }
  func.func @transform_0(%arg0: i32, %arg1: i32) -> (i32, i32) {
    %c0_i32 = arith.constant 0 : i32
    %c0_i32_0 = arith.constant 0 : i32
    return %arg1, %c0_i32 : i32, i32
  }
  func.func @transform_1(%arg0: i32, %arg1: i32) -> (i32, i32) {
    %c0_i32 = arith.constant 0 : i32
    %c0_i32_0 = arith.constant 0 : i32
    return %c0_i32, %arg0 : i32, i32
  }
  func.func @transform_2(%arg0: i32, %arg1: i32) -> (i32, i32) {
    %c0_i32 = arith.constant 0 : i32
    %c0_i32_0 = arith.constant 0 : i32
    return %c0_i32, %arg0 : i32, i32
  }
  func.func @transform_3(%arg0: i32, %arg1: i32) -> (i32, i32) {
    %c0_i32 = arith.constant 0 : i32
    return %arg1, %arg0 : i32, i32
  }
}

</mosaic_0001>

<bundles_post_ra>
// kernel: linear_graph_wrapper.1
= control target key start
LH: loop header
LB: loop body
LE: loop exit
PB: predicated region body
PF: predicated region fallthrough
CT: control target
= control target key end

     0   :  { %vm55_vm0 = vcmask 523264   ;;  %vm329_vm1 = vcmask 785408   ;;  %s783_s1 = inlined_call_operand.vmem [shape: f32[64,96], index: 1, kind: input, shape index: {}]   ;;  %s784_s0 = inlined_call_operand.vmem [shape: f32[203,64], index: 0, kind: input, shape index: {}]   ;;  %s785_s2 = inlined_call_operand.vmem [shape: f32[1,96], index: 2, kind: input, shape index: {}]   ;;  %s786_s3 = inlined_call_operand.vmem [shape: f32[203,96], index: 3, kind: output, shape index: {}]  }
   0x1   :  { %v40_v0 = vld [vmem:[%s783_s1] sm:$0xff]  ;;  %v41_v1 = vld [vmem:[%s783_s1 + $0x8] sm:$0xff]  ;;  %v42_v2 = vld [vmem:[%s783_s1 + $0x10] sm:$0xff] }
   0x2   :  { %v476_v3 = vpack.c.bf16 %v41_v1, %v40_v0  ;;  %v43_v4 = vld [vmem:[%s783_s1 + $0x18] sm:$0xff]  ;;  %v44_v6 = vld [vmem:[%s783_s1 + $0x20] sm:$0xff]  ;;  %v45_v7 = vld [vmem:[%s783_s1 + $0x28] sm:$0xff] }
   0x3   :  { %v480_v5 = vpack.c.bf16 %v43_v4, %v42_v2  ;;  %v14_v8 = vld [vmem:[%s784_s0] sm:$0xff]  ;;  %v28_v9 = vld [vmem:[%s784_s0 + $0x70] sm:$0xff]  ;;  %v484_v10 = vpack.c.bf16 %v45_v7, %v44_v6  ;;  %v47_v12 = vld [vmem:[%s783_s1 + $0x38] sm:$0xff] }
   0x4   :  { %477 = vmatprep.subr.bf16.mxu0 %v476_v3  ;;  %492 = vmatprep.subr.bf16.mxu1 %v476_v3  ;;  %v46_v11 = vld [vmem:[%s783_s1 + $0x30] sm:$0xff]  ;;  %v15_v14 = vld [vmem:[%s784_s0 + $0x8] sm:$0xff]  ;;  %v29_v15 = vld [vmem:[%s784_s0 + $0x78] sm:$0xff] }
   0x5   :  { %479 = vmatpush3.bf16.msra.mxu0 %v476_v3  ;;  %496 = vmatpush3.bf16.msra.mxu1 %v476_v3  ;;  %v488_v13 = vpack.c.bf16 %v47_v12, %v46_v11  ;;  %v16_v16 = vld [vmem:[%s784_s0 + $0x10] sm:$0xff]  ;;  %v30_v17 = vld [vmem:[%s784_s0 + $0x80] sm:$0xff]  ;;  %v17_v18 = vld [vmem:[%s784_s0 + $0x18] sm:$0xff] }
   0x6   :  { %481 = vmatprep.subr.bf16.mxu0 %v480_v5  ;;  %493 = vmatprep.subr.bf16.mxu1 %v480_v5  ;;  %v31_v19 = vld [vmem:[%s784_s0 + $0x88] sm:$0xff]  ;;  %v18_v20 = vld [vmem:[%s784_s0 + $0x20] sm:$0xff]  ;;  %v32_v21 = vld [vmem:[%s784_s0 + $0x90] sm:$0xff] }
   0x7   :  { %437 = vmatprep.mubr.msk.f32.mxu0 %vm55_vm0, %v14_v8  ;;  %458 = vmatprep.mubr.msk.f32.mxu1 %vm55_vm0, %v28_v9  ;;  %v19_v22 = vld [vmem:[%s784_s0 + $0x28] sm:$0xff]  ;;  %v33_v23 = vld [vmem:[%s784_s0 + $0x98] sm:$0xff]  ;;  %v20_v24 = vld [vmem:[%s784_s0 + $0x30] sm:$0xff] }
   0x8   :  { %v34_v25 = vld [vmem:[%s784_s0 + $0xa0] sm:$0xff]  ;;  %v21_v26 = vld [vmem:[%s784_s0 + $0x38] sm:$0xff]  ;;  %v35_v27 = vld [vmem:[%s784_s0 + $0xa8] sm:$0xff] }
   0x9   :  { %483 = vmatpush3.bf16.msra.mxu0 %v480_v5  ;;  %497 = vmatpush3.bf16.msra.mxu1 %v480_v5  ;;  %v22_v28 = vld [vmem:[%s784_s0 + $0x40] sm:$0xff]  ;;  %v36_v29 = vld [vmem:[%s784_s0 + $0xb0] sm:$0xff]  ;;  %v23_v30 = vld [vmem:[%s784_s0 + $0x48] sm:$0xff] }
   0xa   :  { %485 = vmatprep.subr.bf16.mxu0 %v484_v10  ;;  %494 = vmatprep.subr.bf16.mxu1 %v484_v10  ;;  %v37_v31 = vld [vmem:[%s784_s0 + $0xb8] sm:$0xff]  ;;  %v24_v32 = vld [vmem:[%s784_s0 + $0x50] sm:$0xff]  ;;  %v38_v33 = vld [vmem:[%s784_s0 + $0xc0] sm:$0xff] }
   0xb   :  { %v25_v34 = vld [vmem:[%s784_s0 + $0x58] sm:$0xff]  ;;  %v39_v35 = vld [vmem:[%s784_s0 + $0xc8] sm:$0xff]  ;;  %v26_v36 = vld [vmem:[%s784_s0 + $0x60] sm:$0xff] }
   0xc   :  { %v27_v37 = vld [vmem:[%s784_s0 + $0x68] sm:$0xff]  ;;  %v651_v38 = vld [vmem:[%s785_s2] ss:$0 sm:$0xff] }
   0xd   :  { %487 = vmatpush3.bf16.msra.mxu0 %v484_v10  ;;  %498 = vmatpush3.bf16.msra.mxu1 %v484_v10 }
   0xe   :  { %489 = vmatprep.subr.bf16.mxu0 %v488_v13  ;;  %495 = vmatprep.subr.bf16.mxu1 %v488_v13 }
  0x11   :  { %491 = vmatpush3.bf16.msra.mxu0 %v488_v13  ;;  %499 = vmatpush3.bf16.msra.mxu1 %v488_v13 }
  0x14   :  { %438 = vmatmul.mubr.msk.f32.vlgmr.msra.gmra.mrb[0].mxu0 %vm55_vm0, %v15_v14  ;;  %459 = vmatmul.mubr.msk.f32.vlgmr.msra.gmra.mrb[0].mxu1 %vm55_vm0, %v29_v15 }
  0x15   :  { %440 = vmatprep.mubr.msk.f32.mxu0 %vm55_vm0, %v16_v16  ;;  %461 = vmatprep.mubr.msk.f32.mxu1 %vm55_vm0, %v30_v17 }
  0x18   :  { %441 = vmatmul.mubr.msk.f32.gmra.mrb[2].mxu0 %vm55_vm0, %v17_v18  ;;  %462 = vmatmul.mubr.msk.f32.gmra.mrb[2].mxu1 %vm55_vm0, %v31_v19 }
  0x19   :  { %443 = vmatprep.mubr.msk.f32.mxu0 %vm55_vm0, %v18_v20  ;;  %464 = vmatprep.mubr.msk.f32.mxu1 %vm55_vm0, %v32_v21 }
  0x1c   :  { %444 = vmatmul.mubr.msk.f32.gmra.mrb[4].mxu0 %vm55_vm0, %v19_v22  ;;  %465 = vmatmul.mubr.msk.f32.gmra.mrb[4].mxu1 %vm55_vm0, %v33_v23 }
  0x1d   :  { %446 = vmatprep.mubr.msk.f32.mxu0 %vm55_vm0, %v20_v24  ;;  %467 = vmatprep.mubr.msk.f32.mxu1 %vm55_vm0, %v34_v25 }
  0x20   :  { %447 = vmatmul.mubr.msk.f32.gmra.mrb[6].mxu0 %vm55_vm0, %v21_v26  ;;  %468 = vmatmul.mubr.msk.f32.gmra.mrb[6].mxu1 %vm55_vm0, %v35_v27 }
  0x21   :  { %449 = vmatprep.mubr.msk.f32.mxu0 %vm55_vm0, %v22_v28  ;;  %470 = vmatprep.mubr.msk.f32.mxu1 %vm55_vm0, %v36_v29 }
  0x24   :  { %450 = vmatmul.mubr.msk.f32.gmra.mrb[8].mxu0 %vm55_vm0, %v23_v30  ;;  %471 = vmatmul.mubr.msk.f32.gmra.mrb[8].mxu1 %vm55_vm0, %v37_v31 }
  0x25   :  { %452 = vmatprep.mubr.msk.f32.mxu0 %vm55_vm0, %v24_v32  ;;  %473 = vmatprep.mubr.msk.f32.mxu1 %vm55_vm0, %v38_v33 }
  0x28   :  { %453 = vmatmul.mubr.msk.f32.gmra.mrb[10].mxu0 %vm55_vm0, %v25_v34  ;;  %474 = vmatmul.mubr.msk.f32.gmra.mrb[10].mxu1 %vm55_vm0, %v39_v35 }
  0x29   :  { %455 = vmatprep.mubr.msk.f32.mxu0 %vm55_vm0, %v26_v36 }
  0x2c   :  { %456 = vmatmul.mubr.msk.f32.gmra.mrb[12].mxu0 %vm55_vm0, %v27_v37 }
  0xe7   :  { %v439_v39 = vpop.f32.mrb[0].mxu0  ;;  %v460_v40 = vpop.f32.mrb[0].mxu1 }
  0xe8   :  { %v206_v41 = vadd.f32 %v439_v39, %v651_v38  ;;  %v200_v42 = vpop.f32.mrb[1].mxu0  ;;  %v276_v43 = vadd.f32 %v460_v40, %v651_v38  ;;  %v270_v44 = vpop.f32.mrb[1].mxu1 }
  0xe9   :  { %v201_v45 = vadd.f32 %v651_v38, %v200_v42  ;;  %v271_v46 = vadd.f32 %v651_v38, %v270_v44 }
  0xea   :  { %331 = vst.msk [vmem:[%s786_s3 + $0x8] sm:$0xff] %vm329_vm1, %v206_v41  ;;  %345 = vst.msk [vmem:[%s786_s3 + $0x78] sm:$0xff] %vm329_vm1, %v276_v43 }
  0xeb   :  { %330 = vst.msk [vmem:[%s786_s3] sm:$0xff] %vm329_vm1, %v201_v45  ;;  %v442_v47 = vpop.f32.mrb[2].mxu0  ;;  %344 = vst.msk [vmem:[%s786_s3 + $0x70] sm:$0xff] %vm329_vm1, %v271_v46  ;;  %v463_v48 = vpop.f32.mrb[2].mxu1 }
  0xec   :  { %v216_v49 = vadd.f32 %v442_v47, %v651_v38  ;;  %v210_v50 = vpop.f32.mrb[3].mxu0  ;;  %v286_v51 = vadd.f32 %v463_v48, %v651_v38  ;;  %v280_v52 = vpop.f32.mrb[3].mxu1 }
  0xed   :  { %v211_v53 = vadd.f32 %v651_v38, %v210_v50  ;;  %v281_v54 = vadd.f32 %v651_v38, %v280_v52 }
  0xee   :  { %333 = vst.msk [vmem:[%s786_s3 + $0x18] sm:$0xff] %vm329_vm1, %v216_v49  ;;  %347 = vst.msk [vmem:[%s786_s3 + $0x88] sm:$0xff] %vm329_vm1, %v286_v51 }
  0xef   :  { %332 = vst.msk [vmem:[%s786_s3 + $0x10] sm:$0xff] %vm329_vm1, %v211_v53  ;;  %v445_v55 = vpop.f32.mrb[4].mxu0  ;;  %346 = vst.msk [vmem:[%s786_s3 + $0x80] sm:$0xff] %vm329_vm1, %v281_v54  ;;  %v466_v56 = vpop.f32.mrb[4].mxu1 }
  0xf0   :  { %v226_v57 = vadd.f32 %v445_v55, %v651_v38  ;;  %v220_v58 = vpop.f32.mrb[5].mxu0  ;;  %v296_v59 = vadd.f32 %v466_v56, %v651_v38  ;;  %v290_v60 = vpop.f32.mrb[5].mxu1 }
  0xf1   :  { %v221_v61 = vadd.f32 %v651_v38, %v220_v58  ;;  %v291_v62 = vadd.f32 %v651_v38, %v290_v60 }
  0xf2   :  { %335 = vst.msk [vmem:[%s786_s3 + $0x28] sm:$0xff] %vm329_vm1, %v226_v57  ;;  %349 = vst.msk [vmem:[%s786_s3 + $0x98] sm:$0xff] %vm329_vm1, %v296_v59 }
  0xf3   :  { %334 = vst.msk [vmem:[%s786_s3 + $0x20] sm:$0xff] %vm329_vm1, %v221_v61  ;;  %v448_v63 = vpop.f32.mrb[6].mxu0  ;;  %348 = vst.msk [vmem:[%s786_s3 + $0x90] sm:$0xff] %vm329_vm1, %v291_v62  ;;  %v469_v0 = vpop.f32.mrb[6].mxu1 }
  0xf4   :  { %v236_v1 = vadd.f32 %v448_v63, %v651_v38  ;;  %v230_v2 = vpop.f32.mrb[7].mxu0  ;;  %v306_v3 = vadd.f32 %v469_v0, %v651_v38  ;;  %v300_v4 = vpop.f32.mrb[7].mxu1 }
  0xf5   :  { %v231_v5 = vadd.f32 %v651_v38, %v230_v2  ;;  %v301_v6 = vadd.f32 %v651_v38, %v300_v4 }
  0xf6   :  { %337 = vst.msk [vmem:[%s786_s3 + $0x38] sm:$0xff] %vm329_vm1, %v236_v1  ;;  %351 = vst.msk [vmem:[%s786_s3 + $0xa8] sm:$0xff] %vm329_vm1, %v306_v3 }
  0xf7   :  { %336 = vst.msk [vmem:[%s786_s3 + $0x30] sm:$0xff] %vm329_vm1, %v231_v5  ;;  %v451_v7 = vpop.f32.mrb[8].mxu0  ;;  %350 = vst.msk [vmem:[%s786_s3 + $0xa0] sm:$0xff] %vm329_vm1, %v301_v6  ;;  %v472_v8 = vpop.f32.mrb[8].mxu1 }
  0xf8   :  { %v246_v9 = vadd.f32 %v451_v7, %v651_v38  ;;  %v240_v10 = vpop.f32.mrb[9].mxu0  ;;  %v316_v11 = vadd.f32 %v472_v8, %v651_v38  ;;  %v310_v12 = vpop.f32.mrb[9].mxu1 }
  0xf9   :  { %v241_v13 = vadd.f32 %v651_v38, %v240_v10  ;;  %v311_v14 = vadd.f32 %v651_v38, %v310_v12 }
  0xfa   :  { %339 = vst.msk [vmem:[%s786_s3 + $0x48] sm:$0xff] %vm329_vm1, %v246_v9  ;;  %353 = vst.msk [vmem:[%s786_s3 + $0xb8] sm:$0xff] %vm329_vm1, %v316_v11 }
  0xfb   :  { %338 = vst.msk [vmem:[%s786_s3 + $0x40] sm:$0xff] %vm329_vm1, %v241_v13  ;;  %v454_v15 = vpop.f32.mrb[10].mxu0  ;;  %352 = vst.msk [vmem:[%s786_s3 + $0xb0] sm:$0xff] %vm329_vm1, %v311_v14  ;;  %v475_v16 = vpop.f32.mrb[10].mxu1 }
  0xfc   :  { %v256_v17 = vadd.f32 %v454_v15, %v651_v38  ;;  %v250_v18 = vpop.f32.mrb[11].mxu0  ;;  %v326_v19 = vadd.f32 %v475_v16, %v651_v38  ;;  %v320_v20 = vpop.f32.mrb[11].mxu1 }
  0xfd   :  { %v251_v21 = vadd.f32 %v651_v38, %v250_v18  ;;  %v321_v22 = vadd.f32 %v651_v38, %v320_v20 }
  0xfe   :  { %341 = vst.msk [vmem:[%s786_s3 + $0x58] sm:$0xff] %vm329_vm1, %v256_v17  ;;  %355 = vst.msk [vmem:[%s786_s3 + $0xc8] sm:$0xff] %vm329_vm1, %v326_v19 }
  0xff   :  { %340 = vst.msk [vmem:[%s786_s3 + $0x50] sm:$0xff] %vm329_vm1, %v251_v21  ;;  %v457_v23 = vpop.f32.mrb[12].mxu0  ;;  %354 = vst.msk [vmem:[%s786_s3 + $0xc0] sm:$0xff] %vm329_vm1, %v321_v22 }
 0x100   :  { %v266_v24 = vadd.f32 %v457_v23, %v651_v38  ;;  %v260_v25 = vpop.f32.mrb[13].mxu0 }
 0x101   :  { %v261_v26 = vadd.f32 %v651_v38, %v260_v25 }
 0x102   :  { %343 = vst.msk [vmem:[%s786_s3 + $0x68] sm:$0xff] %vm329_vm1, %v266_v24 }
 0x103   :  { %342 = vst.msk [vmem:[%s786_s3 + $0x60] sm:$0xff] %vm329_vm1, %v261_v26 }

</bundles_post_ra>
